<compile_context>
chip_gen: v6e
topology: v6e:2x2x1
jax: 0.10.0
libtpu: 0.0.40
codegen_flags: <defaults>
</compile_context>

<pallas_src>
import functools

import jax
import jax.numpy as jnp
from jax.experimental import pallas as pl
from jax.experimental.pallas import tpu as pltpu


# ------------------------------ helpers -------------------------------------


def _round_up(x, m):
    return ((x + m - 1) // m) * m


def _pick_tile(n_pad, max_tile, *, min_blocks=1):
    """Largest multiple-of-128 tile <= max_tile that divides n_pad.

    If min_blocks > 1 and n_pad is large enough, the tile is additionally
    capped so the grid axis has at least `min_blocks` steps (so a "parallel"
    node axis can shard across both TensorCores on v7x).
    """
    max_tile = max(128, (max_tile // 128) * 128)   # guard non-multiple inputs
    t = min(max_tile, n_pad)
    if min_blocks > 1 and n_pad >= min_blocks * 128:
        t = min(t, max(128, ((n_pad // min_blocks) // 128) * 128))
    while n_pad % t != 0:
        t -= 128
    return t


# --------------------------- fused MLP kernel --------------------------------


def _mlp_kernel(*refs, n_layers):
    # refs = (x_ref, w0, b0, ..., w_{L-1}, b_{L-1}, o_f32_ref, o_lo_ref)
    x_ref = refs[0]
    o32_ref, olo_ref = refs[-2], refs[-1]
    wb = refs[1:-2]
    x = x_ref[...]
    for layer in range(n_layers):
        w = wb[2 * layer][...]
        b = wb[2 * layer + 1][...]
        x = jnp.dot(x, w, preferred_element_type=jnp.float32) + b
        if layer < n_layers - 1:          # ReLU on all but the last layer
            x = jnp.maximum(x, 0.0)
    o32_ref[...] = x                                # f32 logits (model output)
    olo_ref[...] = x.astype(olo_ref.dtype)          # low-precision copy for diffusion


def mlp_pallas(x, params, *, tm, lo_dtype):
    """Fused MLP.  x: [N_pad, F_pad]; params: list of padded (W, b).

    Returns (logits_f32, logits_lo) -- the low-precision copy is written in
    the same epilogue from data already in vregs (no separate astype pass).
    """
    n_pad, f_pad = x.shape
    n_layers = len(params)
    c_pad = params[-1][0].shape[1]
    assert n_pad % tm == 0

    in_specs = [pl.BlockSpec((tm, f_pad), lambda i: (i, 0))]   # node tile
    flat_args = [x]
    flops = 0
    weight_bytes = 0
    for (w, b) in params:
        # Tiny, fully VMEM-resident weights/biases (constant index_map).
        in_specs.append(pl.BlockSpec(w.shape, lambda i: (0, 0)))
        in_specs.append(pl.BlockSpec(b.shape, lambda i: (0, 0)))
        flat_args += [w, b]
        flops += 2 * n_pad * w.shape[0] * w.shape[1]
        weight_bytes += (w.size + b.size) * 4

    out_bytes = n_pad * c_pad * (4 + jnp.dtype(lo_dtype).itemsize)
    cost = pl.CostEstimate(
        flops=flops,
        transcendentals=0,
        bytes_accessed=x.size * x.dtype.itemsize + weight_bytes + out_bytes,
    )

    return pl.pallas_call(
        functools.partial(_mlp_kernel, n_layers=n_layers),
        out_shape=(jax.ShapeDtypeStruct((n_pad, c_pad), jnp.float32),
                   jax.ShapeDtypeStruct((n_pad, c_pad), lo_dtype)),
        grid_spec=pltpu.PrefetchScalarGridSpec(
            num_scalar_prefetch=0,
            grid=(n_pad // tm,),
            in_specs=in_specs,
            out_specs=[pl.BlockSpec((tm, c_pad), lambda i: (i, 0)),
                       pl.BlockSpec((tm, c_pad), lambda i: (i, 0))],
        ),
        compiler_params=pltpu.CompilerParams(
            dimension_semantics=("parallel",),
            vmem_limit_bytes=48 * 1024 * 1024,
        ),
        cost_estimate=cost,
    )(*flat_args)


# --------------------------- diffusion kernels --------------------------------


def _diffuse_resident_kernel(ppr_ref, logits_ref, o_ref, *, tk):
    # logits fully VMEM-resident (constant block index -> DMA'd once); the
    # (tk, C) chunk for this k step is sliced in-kernel.  Accumulate directly
    # into the f32 output block (constant output index over k).
    k = pl.program_id(1)

    @pl.when(k == 0)
    def _():
        o_ref[...] = jnp.zeros_like(o_ref)

    start = pl.multiple_of(k * tk, tk)
    o_ref[...] += jnp.dot(ppr_ref[...], logits_ref[pl.ds(start, tk), :],
                          preferred_element_type=jnp.float32)


def _diffuse_tiled_kernel(ppr_ref, logits_ref, o_ref):
    # Fallback for graphs where the full logits do not fit the VMEM budget.
    @pl.when(pl.program_id(1) == 0)
    def _():
        o_ref[...] = jnp.zeros_like(o_ref)

    o_ref[...] += jnp.dot(ppr_ref[...], logits_ref[...],
                          preferred_element_type=jnp.float32)


def diffuse_pallas(ppr, logits, *, tm, tk,
                   logits_resident_bytes=8 * 1024 * 1024):
    """diffused = ppr @ logits, K-tiled, accumulating into the f32 output."""
    n_pad, n_pad2 = ppr.shape
    nl, c_pad = logits.shape
    assert n_pad == n_pad2 == nl
    assert n_pad % tm == 0 and n_pad % tk == 0

    logits_bytes = n_pad * c_pad * logits.dtype.itemsize
    resident = logits_bytes <= logits_resident_bytes

    if resident:
        kernel = functools.partial(_diffuse_resident_kernel, tk=tk)
        logits_spec = pl.BlockSpec((n_pad, c_pad), lambda i, k: (0, 0))
        logits_traffic = logits_bytes                       # fetched once
    else:
        kernel = _diffuse_tiled_kernel
        logits_spec = pl.BlockSpec((tk, c_pad), lambda i, k: (k, 0))
        logits_traffic = (n_pad // tm) * logits_bytes       # re-read per i tile

    cost = pl.CostEstimate(
        flops=2 * n_pad * n_pad * c_pad,
        transcendentals=0,
        bytes_accessed=(n_pad * n_pad * ppr.dtype.itemsize
                        + logits_traffic
                        + n_pad * c_pad * 4),
    )

    return pl.pallas_call(
        kernel,
        out_shape=jax.ShapeDtypeStruct((n_pad, c_pad), jnp.float32),
        grid_spec=pltpu.PrefetchScalarGridSpec(
            num_scalar_prefetch=0,
            grid=(n_pad // tm, n_pad // tk),
            in_specs=[
                pl.BlockSpec((tm, tk), lambda i, k: (i, k)),   # ppr tile
                logits_spec,
            ],
            out_specs=pl.BlockSpec((tm, c_pad), lambda i, k: (i, 0)),
        ),
        compiler_params=pltpu.CompilerParams(
            dimension_semantics=("parallel", "arbitrary"),
            vmem_limit_bytes=48 * 1024 * 1024,
        ),
        cost_estimate=cost,
    )(ppr, logits)


# --------------------------- model wrapper -----------------------------------


def init_pippnp_params(key, n_features, n_classes, n_hidden):
    """Deterministic init matching nn.Linear shapes (uniform +/- 1/sqrt(fan_in))."""
    dims = [n_features] + list(n_hidden) + [n_classes]
    params = []
    for i in range(len(dims) - 1):
        fan_in, fan_out = dims[i], dims[i + 1]
        key, kw, kb = jax.random.split(key, 3)
        bound = 1.0 / jnp.sqrt(fan_in)
        w = jax.random.uniform(kw, (fan_in, fan_out), jnp.float32, -bound, bound)
        b = jax.random.uniform(kb, (1, fan_out), jnp.float32, -bound, bound)
        params.append((w, b))
    return params


def prepare_ppr(ppr, *, diffuse_dtype=jnp.bfloat16):
    """One-time O(N^2) pad + down-cast of the PPR matrix.

    Call ONCE and reuse across forwards: this op moves roughly as many HBM
    bytes as the diffusion kernel itself, so it must not sit on the
    per-forward path.  (On v5e/v6e an int8-quantized variant, or fp8-e4m3 on
    v7x, can be substituted here to halve the O(N^2) traffic again.)
    """
    n = ppr.shape[0]
    n_pad = _round_up(n, 128)
    return jnp.pad(ppr, ((0, n_pad - n), (0, n_pad - n))).astype(diffuse_dtype)


def pippnp_forward(params, attr, ppr_prepared, *, tm_mlp=1024, tm_diff=1024,
                   tk_diff=2048):
    N, F = attr.shape
    C = params[-1][0].shape[1]
    n_pad = ppr_prepared.shape[0]
    assert ppr_prepared.shape == (n_pad, n_pad) and n_pad >= N
    f_pad = _round_up(F, 128)

    # Node-axis tiles get >= 2 grid steps when possible (v7x megacore).
    tm_mlp = _pick_tile(n_pad, tm_mlp, min_blocks=2)
    tm_diff = _pick_tile(n_pad, tm_diff, min_blocks=2)
    tk_diff = _pick_tile(n_pad, tk_diff)

    # Cheap O(N*F) pads; the O(N^2) ppr pad/cast lives in prepare_ppr().
    attr_p = jnp.pad(attr, ((0, n_pad - N), (0, f_pad - F)))

    padded_params = []
    in_pad = f_pad
    for (w, b) in params:
        out_pad = _round_up(w.shape[1], 128)
        w_p = jnp.pad(w, ((0, in_pad - w.shape[0]), (0, out_pad - w.shape[1])))
        b_p = jnp.pad(b, ((0, 0), (0, out_pad - b.shape[1])))
        padded_params.append((w_p, b_p))
        in_pad = out_pad

    # One fused pallas_call for the whole MLP; it also emits the bf16 logits
    # the diffusion consumes (no separate astype pass over HBM).
    logits_p, logits_lo_p = mlp_pallas(
        attr_p, padded_params, tm=tm_mlp, lo_dtype=ppr_prepared.dtype)

    diffused_p = diffuse_pallas(ppr_prepared, logits_lo_p,
                                tm=tm_diff, tk=tk_diff)

    return logits_p[:N, :C], diffused_p[:N, :C]


def pippnp_reference(params, attr, ppr):
    x = attr
    for (w, b) in params[:-1]:
        x = jnp.maximum(x @ w + b, 0.0)
    w_last, b_last = params[-1]
    logits = x @ w_last + b_last
    return logits, ppr @ logits


# ------------------------------- main ---------------------------------------

if __name__ == "__main__":
    N = 200            # number of nodes (deliberately not a multiple of 128)
    n_features = 52
    n_hidden = [64, 48]
    n_classes = 7

    key = jax.random.PRNGKey(0)
    k_attr, k_ppr, k_params = jax.random.split(key, 3)

    attr = jax.random.normal(k_attr, (N, n_features), jnp.float32)
    # Row-stochastic PPR-like matrix (softmax over random scores).
    ppr = jax.nn.softmax(jax.random.normal(k_ppr, (N, N), jnp.float32), axis=-1)

    params = init_pippnp_params(k_params, n_features, n_classes, n_hidden)

    # One-time prep of the O(N^2) operand (amortized across forwards).
    ppr_prep = prepare_ppr(ppr)

    fwd = jax.jit(pippnp_forward)
    logits, diffused = fwd(params, attr, ppr_prep)
    jax.block_until_ready((logits, diffused))

    # Correctness check against plain-JAX reference.
    ref_logits, ref_diffused = pippnp_reference(params, attr, ppr)
    assert logits.shape == (N, n_classes) and diffused.shape == (N, n_classes)
    assert jnp.allclose(logits, ref_logits, atol=1e-3, rtol=1e-3), (
        float(jnp.max(jnp.abs(logits - ref_logits))))
    # Diffusion uses bf16 inputs with f32 accumulation -> looser tolerance.
    assert jnp.allclose(diffused, ref_diffused, atol=5e-2, rtol=5e-2), (
        float(jnp.max(jnp.abs(diffused - ref_diffused))))

    print("KERNEL_OK")
</pallas_src>

<mosaic_0001>
module attributes {stable_mosaic.version = 11 : i64} {
  func.func @_mlp_kernel(%arg0: i32, %arg1: memref<128x128xf32, #tpu.memory_space<vmem>>, %arg2: memref<128x128xf32, #tpu.memory_space<vmem>>, %arg3: memref<1x128xf32, #tpu.memory_space<vmem>>, %arg4: memref<128x128xf32, #tpu.memory_space<vmem>>, %arg5: memref<1x128xf32, #tpu.memory_space<vmem>>, %arg6: memref<128x128xf32, #tpu.memory_space<vmem>>, %arg7: memref<1x128xf32, #tpu.memory_space<vmem>>, %arg8: memref<128x128xf32, #tpu.memory_space<vmem>>, %arg9: memref<128x128xbf16, #tpu.memory_space<vmem>>) attributes {dimension_semantics = [#tpu.dimension_semantics<parallel>], iteration_bounds = array<i64: 2>, scalar_prefetch = 0 : i64, scratch_operands = 0 : i64, tpu.core_type = #tpu.core_type<tc>, window_params = [{transform_indices = @transform_0, window_bounds = array<i64: 128, 128>}, {pipeline_mode = #tpu.pipeline_mode<synchronous>, transform_indices = @transform_1, window_bounds = array<i64: 128, 128>}, {pipeline_mode = #tpu.pipeline_mode<synchronous>, transform_indices = @transform_2, window_bounds = array<i64: 1, 128>}, {pipeline_mode = #tpu.pipeline_mode<synchronous>, transform_indices = @transform_3, window_bounds = array<i64: 128, 128>}, {pipeline_mode = #tpu.pipeline_mode<synchronous>, transform_indices = @transform_4, window_bounds = array<i64: 1, 128>}, {pipeline_mode = #tpu.pipeline_mode<synchronous>, transform_indices = @transform_5, window_bounds = array<i64: 128, 128>}, {pipeline_mode = #tpu.pipeline_mode<synchronous>, transform_indices = @transform_6, window_bounds = array<i64: 1, 128>}, {transform_indices = @transform_7, window_bounds = array<i64: 128, 128>}, {transform_indices = @transform_8, window_bounds = array<i64: 128, 128>}]} {
    %c0 = arith.constant 0 : index
    %c0_0 = arith.constant 0 : index
    %0 = vector.load %arg1[%c0, %c0_0] : memref<128x128xf32, #tpu.memory_space<vmem>>, vector<128x128xf32>
    %c0_1 = arith.constant 0 : index
    %c0_2 = arith.constant 0 : index
    %1 = vector.load %arg2[%c0_1, %c0_2] : memref<128x128xf32, #tpu.memory_space<vmem>>, vector<128x128xf32>
    %c0_3 = arith.constant 0 : index
    %c0_4 = arith.constant 0 : index
    %2 = vector.load %arg3[%c0_3, %c0_4] : memref<1x128xf32, #tpu.memory_space<vmem>>, vector<1x128xf32>
    %cst = arith.constant dense<0.000000e+00> : vector<128x128xf32>
    %3 = tpu.matmul %0, %1, %cst {dimension_numbers = #tpu.dot_dimension_numbers<[1], [0], [0], [1], [0, 0, 1, 1], [], []>} : vector<128x128xf32>, vector<128x128xf32>, vector<128x128xf32> -> vector<128x128xf32>
    %4 = vector.broadcast %2 : vector<1x128xf32> to vector<128x128xf32>
    %5 = arith.addf %3, %4 : vector<128x128xf32>
    %cst_5 = arith.constant 0.000000e+00 : f32
    %6 = vector.broadcast %cst_5 : f32 to vector<128x128xf32>
    %7 = arith.maximumf %5, %6 : vector<128x128xf32>
    %c0_6 = arith.constant 0 : index
    %c0_7 = arith.constant 0 : index
    %8 = vector.load %arg4[%c0_6, %c0_7] : memref<128x128xf32, #tpu.memory_space<vmem>>, vector<128x128xf32>
    %c0_8 = arith.constant 0 : index
    %c0_9 = arith.constant 0 : index
    %9 = vector.load %arg5[%c0_8, %c0_9] : memref<1x128xf32, #tpu.memory_space<vmem>>, vector<1x128xf32>
    %cst_10 = arith.constant dense<0.000000e+00> : vector<128x128xf32>
    %10 = tpu.matmul %7, %8, %cst_10 {dimension_numbers = #tpu.dot_dimension_numbers<[1], [0], [0], [1], [0, 0, 1, 1], [], []>} : vector<128x128xf32>, vector<128x128xf32>, vector<128x128xf32> -> vector<128x128xf32>
    %11 = vector.broadcast %9 : vector<1x128xf32> to vector<128x128xf32>
    %12 = arith.addf %10, %11 : vector<128x128xf32>
    %cst_11 = arith.constant 0.000000e+00 : f32
    %13 = vector.broadcast %cst_11 : f32 to vector<128x128xf32>
    %14 = arith.maximumf %12, %13 : vector<128x128xf32>
    %c0_12 = arith.constant 0 : index
    %c0_13 = arith.constant 0 : index
    %15 = vector.load %arg6[%c0_12, %c0_13] : memref<128x128xf32, #tpu.memory_space<vmem>>, vector<128x128xf32>
    %c0_14 = arith.constant 0 : index
    %c0_15 = arith.constant 0 : index
    %16 = vector.load %arg7[%c0_14, %c0_15] : memref<1x128xf32, #tpu.memory_space<vmem>>, vector<1x128xf32>
    %cst_16 = arith.constant dense<0.000000e+00> : vector<128x128xf32>
    %17 = tpu.matmul %14, %15, %cst_16 {dimension_numbers = #tpu.dot_dimension_numbers<[1], [0], [0], [1], [0, 0, 1, 1], [], []>} : vector<128x128xf32>, vector<128x128xf32>, vector<128x128xf32> -> vector<128x128xf32>
    %18 = vector.broadcast %16 : vector<1x128xf32> to vector<128x128xf32>
    %19 = arith.addf %17, %18 : vector<128x128xf32>
    %c0_17 = arith.constant 0 : index
    %c0_18 = arith.constant 0 : index
    %20 = vector.load %arg8[%c0_17, %c0_18] : memref<128x128xf32, #tpu.memory_space<vmem>>, vector<128x128xf32>
    tpu.vector_store %arg8[%c0_17, %c0_18], %19 {strides = array<i32>} : memref<128x128xf32, #tpu.memory_space<vmem>>, vector<128x128xf32>,
    %21 = arith.truncf %19 : vector<128x128xf32> to vector<128x128xbf16>
    %c0_19 = arith.constant 0 : index
    %c0_20 = arith.constant 0 : index
    %22 = vector.load %arg9[%c0_19, %c0_20] : memref<128x128xbf16, #tpu.memory_space<vmem>>, vector<128x128xbf16>
    tpu.vector_store %arg9[%c0_19, %c0_20], %21 {strides = array<i32>} : memref<128x128xbf16, #tpu.memory_space<vmem>>, vector<128x128xbf16>,
    return
  }
  func.func @transform_0(%arg0: i32) -> (i32, i32) {
    %c0_i32 = arith.constant 0 : i32
    %c0_i32_0 = arith.constant 0 : i32
    return %arg0, %c0_i32 : i32, i32
  }
  func.func @transform_1(%arg0: i32) -> (i32, i32) {
    %c0_i32 = arith.constant 0 : i32
    %c0_i32_0 = arith.constant 0 : i32
    %c0_i32_1 = arith.constant 0 : i32
    return %c0_i32, %c0_i32_0 : i32, i32
  }
  func.func @transform_2(%arg0: i32) -> (i32, i32) {
    %c0_i32 = arith.constant 0 : i32
    %c0_i32_0 = arith.constant 0 : i32
    %c0_i32_1 = arith.constant 0 : i32
    return %c0_i32, %c0_i32_0 : i32, i32
  }
  func.func @transform_3(%arg0: i32) -> (i32, i32) {
    %c0_i32 = arith.constant 0 : i32
    %c0_i32_0 = arith.constant 0 : i32
    %c0_i32_1 = arith.constant 0 : i32
    return %c0_i32, %c0_i32_0 : i32, i32
  }
  func.func @transform_4(%arg0: i32) -> (i32, i32) {
    %c0_i32 = arith.constant 0 : i32
    %c0_i32_0 = arith.constant 0 : i32
    %c0_i32_1 = arith.constant 0 : i32
    return %c0_i32, %c0_i32_0 : i32, i32
  }
  func.func @transform_5(%arg0: i32) -> (i32, i32) {
    %c0_i32 = arith.constant 0 : i32
    %c0_i32_0 = arith.constant 0 : i32
    %c0_i32_1 = arith.constant 0 : i32
    return %c0_i32, %c0_i32_0 : i32, i32
  }
  func.func @transform_6(%arg0: i32) -> (i32, i32) {
    %c0_i32 = arith.constant 0 : i32
    %c0_i32_0 = arith.constant 0 : i32
    %c0_i32_1 = arith.constant 0 : i32
    return %c0_i32, %c0_i32_0 : i32, i32
  }
  func.func @transform_7(%arg0: i32) -> (i32, i32) {
    %c0_i32 = arith.constant 0 : i32
    %c0_i32_0 = arith.constant 0 : i32
    return %arg0, %c0_i32 : i32, i32
  }
  func.func @transform_8(%arg0: i32) -> (i32, i32) {
    %c0_i32 = arith.constant 0 : i32
    %c0_i32_0 = arith.constant 0 : i32
    return %arg0, %c0_i32 : i32, i32
  }
}

module attributes {stable_mosaic.version = 11 : i64} {
  func.func @_diffuse_resident_kernel(%arg0: i32, %arg1: i32, %arg2: memref<128x256xbf16, #tpu.memory_space<vmem>>, %arg3: memref<256x128xbf16, #tpu.memory_space<vmem>>, %arg4: memref<128x128xf32, #tpu.memory_space<vmem>>) attributes {dimension_semantics = [#tpu.dimension_semantics<parallel>, #tpu.dimension_semantics<arbitrary>], iteration_bounds = array<i64: 2, 1>, scalar_prefetch = 0 : i64, scratch_operands = 0 : i64, tpu.core_type = #tpu.core_type<tc>, window_params = [{transform_indices = @transform_0, window_bounds = array<i64: 128, 256>}, {pipeline_mode = #tpu.pipeline_mode<synchronous>, transform_indices = @transform_1, window_bounds = array<i64: 256, 128>}, {transform_indices = @transform_2, window_bounds = array<i64: 128, 128>}]} {
    %c0_i32 = arith.constant 0 : i32
    %0 = arith.cmpi eq, %arg1, %c0_i32 : i32
    %1 = arith.extui %0 : i1 to i32
    %c0_i32_0 = arith.constant 0 : i32
    %2 = arith.cmpi ne, %1, %c0_i32_0 : i32
    scf.if %2 {
      %cst_7 = arith.constant 0.000000e+00 : f32
      %12 = vector.broadcast %cst_7 : f32 to vector<128x128xf32>
      %c0_8 = arith.constant 0 : index
      %c0_9 = arith.constant 0 : index
      %13 = vector.load %arg4[%c0_8, %c0_9] : memref<128x128xf32, #tpu.memory_space<vmem>>, vector<128x128xf32>
      tpu.vector_store %arg4[%c0_8, %c0_9], %12 {strides = array<i32>} : memref<128x128xf32, #tpu.memory_space<vmem>>, vector<128x128xf32>,
    } else {
    }
    %c256_i32 = arith.constant 256 : i32
    %3 = arith.muli %arg1, %c256_i32 : i32
    %4 = tpu.assume_multiple %3, 256 : i32
    %c0 = arith.constant 0 : index
    %c0_1 = arith.constant 0 : index
    %5 = vector.load %arg4[%c0, %c0_1] : memref<128x128xf32, #tpu.memory_space<vmem>>, vector<128x128xf32>
    %c0_2 = arith.constant 0 : index
    %c0_3 = arith.constant 0 : index
    %6 = vector.load %arg2[%c0_2, %c0_3] : memref<128x256xbf16, #tpu.memory_space<vmem>>, vector<128x256xbf16>
    %7 = arith.index_cast %4 : i32 to index
    %c0_4 = arith.constant 0 : index
    %8 = vector.load %arg3[%7, %c0_4] : memref<256x128xbf16, #tpu.memory_space<vmem>>, vector<256x128xbf16>
    %cst = arith.constant dense<0.000000e+00> : vector<128x128xf32>
    %9 = tpu.matmul %6, %8, %cst {dimension_numbers = #tpu.dot_dimension_numbers<[1], [0], [0], [1], [0, 0, 1, 1], [], []>} : vector<128x256xbf16>, vector<256x128xbf16>, vector<128x128xf32> -> vector<128x128xf32>
    %10 = arith.addf %5, %9 : vector<128x128xf32>
    %c0_5 = arith.constant 0 : index
    %c0_6 = arith.constant 0 : index
    %11 = vector.load %arg4[%c0_5, %c0_6] : memref<128x128xf32, #tpu.memory_space<vmem>>, vector<128x128xf32>
    tpu.vector_store %arg4[%c0_5, %c0_6], %10 {strides = array<i32>} : memref<128x128xf32, #tpu.memory_space<vmem>>, vector<128x128xf32>,
    return
  }
  func.func @transform_0(%arg0: i32, %arg1: i32) -> (i32, i32) {
    %c0_i32 = arith.constant 0 : i32
    return %arg0, %arg1 : i32, i32
  }
  func.func @transform_1(%arg0: i32, %arg1: i32) -> (i32, i32) {
    %c0_i32 = arith.constant 0 : i32
    %c0_i32_0 = arith.constant 0 : i32
    %c0_i32_1 = arith.constant 0 : i32
    return %c0_i32, %c0_i32_0 : i32, i32
  }
  func.func @transform_2(%arg0: i32, %arg1: i32) -> (i32, i32) {
    %c0_i32 = arith.constant 0 : i32
    %c0_i32_0 = arith.constant 0 : i32
    return %arg0, %c0_i32 : i32, i32
  }
}

</mosaic_0001>

<bundles_post_ra>
// kernel: pippnp_forward.3
= control target key start
LH: loop header
LB: loop body
LE: loop exit
PB: predicated region body
PF: predicated region fallthrough
CT: control target
= control target key end

     0   :  { %s875_s9 = smov 0   ;;  %s877_s10 = smov 0   ;;  %s999_s0 = inlined_call_operand.vmem [shape: bf16[256,256], index: 0, kind: input, shape index: {}]   ;;  %s1000_s1 = inlined_call_operand.vmem [shape: bf16[256,128], index: 1, kind: input, shape index: {}]   ;;  %s1001_s2 = inlined_call_operand.vmem [shape: f32[256,128], index: 2, kind: output, shape index: {}]  }
   0x1   :  { %s879_s11 = smov 0  }
   0x2 LB: > { %s24_s12 = sadd.s32 1, %s854_s10  ;;  %p650_p0 = scmp.ge.s32.totalorder %s858_s11, 1  ;;  %s858_s11 = sphi %s879_s11, %s12_s11   ;;  %s854_s10 = sphi %s877_s10, %s1003_s10   ;;  %s850_s9 = sphi %s875_s9, %s1002_s9  }
   0x3   : > { %p26_p1 = scmp.ge.s32.totalorder %s24_s12, 2  ;;  %p133_p2 = scmp.lt.s32.totalorder %s858_s11, 3 }
   0x5   : > { %s1005_s12 = smov (%p26_p1, %s24_s12), 0  ;;  %p134_p3 = pnand %p650_p0, %p133_p2 }
   0x6   : > { %s651_s15 = sshll.u32 (!%p134_p3), %s850_s9, 4 }
   0x7   : > { %137 = sbr.rel (%p134_p3) target bundleno = 271 (0x10f), region = 28  ;;  %p162_p4 = scmp.lt.s32.totalorder (!%p134_p3), %s651_s15, 31 }
   0xc   : > { %v796_v0 = vld [vmem:[%s1000_s1 + $0x78] sm:$0xff]   ;;  %v798_v2 = vld [vmem:[%s1000_s1 + $0x70] sm:$0xff]   ;;  %v800_v4 = vld [vmem:[%s1000_s1 + $0x68] sm:$0xff]   ;;  %s1007_s15 = smov (!%p162_p4, %s651_s15), 31 }
   0xd   : > { %v797_v1 = vld [vmem:[%s1000_s1 + $0x38] sm:$0xff]   ;;  %691 = vmatprep.subr.bf16.mxu0 %v796_v0  ;;  %755 = vmatprep.subr.bf16.mxu1 %v796_v0  ;;  %v799_v3 = vld [vmem:[%s1000_s1 + $0x30] sm:$0xff]   ;;  %v801_v5 = vld [vmem:[%s1000_s1 + $0x28] sm:$0xff]   ;;  %s690_s30 = sshll.u32 %s1007_s15, 3 }
   0xe   : > { %692 = vmatpush3.bf16.msra.mxu0 %v797_v1  ;;  %763 = vmatpush3.bf16.msra.mxu1 %v797_v1  ;;  %v802_v6 = vld [vmem:[%s1000_s1 + $0x60] sm:$0xff]   ;;  %v804_v8 = vld [vmem:[%s1000_s1 + $0x58] sm:$0xff]   ;;  %s928_s7 = scalar_lea.vmem %s999_s0, %s690_s30  ;;  %v806_v10 = vld [vmem:[%s1000_s1 + $0x50] sm:$0xff]   ;;  %s972_s28 = scalar_lea.vmem %s1001_s2, %s690_s30 }
   0xf   : > { %693 = vmatprep.subr.bf16.mxu0 %v798_v2  ;;  %756 = vmatprep.subr.bf16.mxu1 %v798_v2  ;;  %v803_v7 = vld [vmem:[%s1000_s1 + $0x20] sm:$0xff]   ;;  %v805_v9 = vld [vmem:[%s1000_s1 + $0x18] sm:$0xff]   ;;  %v807_v13 = vld [vmem:[%s1000_s1 + $0x10] sm:$0xff]  }
  0x10   : > { %v814_v11 = vld [vmem:[%s928_s7 + $0x4] ss:$8 sps:$4 sm:$0xff]   ;;  %v812_v18 = vld [vmem:[%s928_s7] ss:$8 sps:$4 sm:$0xff]   ;;  %v818_v20 = vld [vmem:[%s928_s7 + $0x14] ss:$8 sps:$4 sm:$0xff]  }
  0x11   : > { %v817_v12 = vld [vmem:[%s928_s7 + $0x44] ss:$8 sps:$4 sm:$0xff]   ;;  %476 = vmatprep.mubr.bf16.mxu0 %v814_v11  ;;  %v815_v19 = vld [vmem:[%s928_s7 + $0x40] ss:$8 sps:$4 sm:$0xff]   ;;  %v820_v21 = vld [vmem:[%s928_s7 + $0x54] ss:$8 sps:$4 sm:$0xff]  }
  0x12   : > { %694 = vmatpush3.bf16.msra.mxu0 %v799_v3  ;;  %764 = vmatpush3.bf16.msra.mxu1 %v799_v3  ;;  %v808_v14 = vld [vmem:[%s1000_s1 + $0x48] sm:$0xff]   ;;  %v810_v16 = vld [vmem:[%s1000_s1 + $0x40] sm:$0xff]   ;;  %v822_v22 = vld [vmem:[%s928_s7 + $0x10] ss:$8 sps:$4 sm:$0xff]  }
  0x13   : > { %695 = vmatprep.subr.bf16.mxu0 %v800_v4  ;;  %757 = vmatprep.subr.bf16.mxu1 %v800_v4  ;;  %v809_v15 = vld [vmem:[%s1000_s1 + $0x8] sm:$0xff]   ;;  %v811_v17 = vld [vmem:[%s1000_s1] sm:$0xff]   ;;  %v823_v23 = vld [vmem:[%s928_s7 + $0x50] ss:$8 sps:$4 sm:$0xff]  }
  0x14   : > { %508 = vmatprep.mubr.bf16.mxu1 %v817_v12  ;;  %v824_v24 = vld [vmem:[%s928_s7 + $0x24] ss:$8 sps:$4 sm:$0xff]   ;;  %v828_v26 = vld [vmem:[%s928_s7 + $0x20] ss:$8 sps:$4 sm:$0xff]   ;;  %v830_v28 = vld [vmem:[%s928_s7 + $0x34] ss:$8 sps:$4 sm:$0xff]  }
  0x15   : > { %v826_v25 = vld [vmem:[%s928_s7 + $0x64] ss:$8 sps:$4 sm:$0xff]   ;;  %v829_v27 = vld [vmem:[%s928_s7 + $0x60] ss:$8 sps:$4 sm:$0xff]   ;;  %v832_v29 = vld [vmem:[%s928_s7 + $0x74] ss:$8 sps:$4 sm:$0xff]  }
  0x16   : > { %696 = vmatpush3.bf16.msra.mxu0 %v801_v5  ;;  %765 = vmatpush3.bf16.msra.mxu1 %v801_v5  ;;  %v834_v30 = vld [vmem:[%s928_s7 + $0x30] ss:$8 sps:$4 sm:$0xff]  }
  0x17   : > { %697 = vmatprep.subr.bf16.mxu0 %v802_v6  ;;  %758 = vmatprep.subr.bf16.mxu1 %v802_v6  ;;  %v835_v31 = vld [vmem:[%s928_s7 + $0x70] ss:$8 sps:$4 sm:$0xff]  }
  0x1a   : > { %698 = vmatpush3.bf16.msra.mxu0 %v803_v7  ;;  %766 = vmatpush3.bf16.msra.mxu1 %v803_v7 }
  0x1b   : > { %699 = vmatprep.subr.bf16.mxu0 %v804_v8  ;;  %759 = vmatprep.subr.bf16.mxu1 %v804_v8 }
  0x1e   : > { %700 = vmatpush3.bf16.msra.mxu0 %v805_v9  ;;  %767 = vmatpush3.bf16.msra.mxu1 %v805_v9 }
  0x1f   : > { %701 = vmatprep.subr.bf16.mxu0 %v806_v10  ;;  %760 = vmatprep.subr.bf16.mxu1 %v806_v10 }
  0x22   : > { %702 = vmatpush3.bf16.msra.mxu0 %v807_v13  ;;  %768 = vmatpush3.bf16.msra.mxu1 %v807_v13 }
  0x23   : > { %703 = vmatprep.subr.bf16.mxu0 %v808_v14  ;;  %761 = vmatprep.subr.bf16.mxu1 %v808_v14 }
  0x26   : > { %704 = vmatpush3.bf16.msra.mxu0 %v809_v15  ;;  %769 = vmatpush3.bf16.msra.mxu1 %v809_v15 }
  0x27   : > { %705 = vmatprep.subr.bf16.mxu0 %v810_v16  ;;  %762 = vmatprep.subr.bf16.mxu1 %v810_v16 }
  0x2a   : > { %706 = vmatpush3.bf16.msra.mxu0 %v811_v17  ;;  %770 = vmatpush3.bf16.msra.mxu1 %v811_v17 }
  0x2d   : > { %477 = vmatmul.mubr.bf16.vlgmr.msra.gmra.mxu0 %v812_v18  ;;  %509 = vmatmul.mubr.bf16.vlgmr.msra.gmra.mxu1 %v815_v19 }
  0x2e   : > { %484 = vmatprep.mubr.bf16.mxu0 %v818_v20  ;;  %516 = vmatprep.mubr.bf16.mxu1 %v820_v21 }
  0x35   : > { %485 = vmatmul.mubr.bf16.gmra.mxu0 %v822_v22  ;;  %517 = vmatmul.mubr.bf16.gmra.mxu1 %v823_v23 }
  0x36   : > { %492 = vmatprep.mubr.bf16.mxu0 %v824_v24  ;;  %524 = vmatprep.mubr.bf16.mxu1 %v826_v25 }
  0x3d   : > { %493 = vmatmul.mubr.bf16.gmra.mxu0 %v828_v26  ;;  %525 = vmatmul.mubr.bf16.gmra.mxu1 %v829_v27 }
  0x3e   : > { %500 = vmatprep.mubr.bf16.mxu0 %v830_v28  ;;  %532 = vmatprep.mubr.bf16.mxu1 %v832_v29 }
  0x45   : > { %501 = vmatmul.mubr.bf16.gmra.mxu0 %v834_v30  ;;  %533 = vmatmul.mubr.bf16.gmra.mxu1 %v835_v31 }
  0xed   : > { %v707_v32 = vpop.f32.mrf.mxu0  ;;  %v731_v33 = vpop.f32.mrf.mxu1 }
  0xef   : > { %v708_v34 = vpop.f32.mrf.mxu0  ;;  %v732_v35 = vpop.f32.mrf.mxu1 }
  0xf0   : > { %v709_v36 = vadd.f32 %v708_v34, %v707_v32  ;;  %v733_v37 = vadd.f32 %v732_v35, %v731_v33 }
  0xf1   : > { %v710_v38 = vpop.f32.mrf.mxu0  ;;  %v734_v39 = vpop.f32.mrf.mxu1 }
  0xf2   : > { %557 = vst [vmem:[%s972_s28] sm:$0xff] %v709_v36  ;;  %565 = vst [vmem:[%s972_s28 + $0x40] sm:$0xff] %v733_v37 }
  0xf3   : > { %v711_v40 = vpop.f32.mrf.mxu0  ;;  %v735_v41 = vpop.f32.mrf.mxu1 }
  0xf4   : > { %v712_v42 = vadd.f32 %v711_v40, %v710_v38  ;;  %v736_v43 = vadd.f32 %v735_v41, %v734_v39 }
  0xf5   : > { %v713_v44 = vpop.f32.mrf.mxu0  ;;  %v737_v45 = vpop.f32.mrf.mxu1 }
  0xf6   : > { %558 = vst [vmem:[%s972_s28 + $0x8] sm:$0xff] %v712_v42  ;;  %566 = vst [vmem:[%s972_s28 + $0x48] sm:$0xff] %v736_v43 }
  0xf7   : > { %v714_v46 = vpop.f32.mrf.mxu0  ;;  %v738_v47 = vpop.f32.mrf.mxu1 }
  0xf8   : > { %v715_v48 = vadd.f32 %v714_v46, %v713_v44  ;;  %v739_v49 = vadd.f32 %v738_v47, %v737_v45 }
  0xf9   : > { %v716_v50 = vpop.f32.mrf.mxu0  ;;  %v740_v51 = vpop.f32.mrf.mxu1 }
  0xfa   : > { %559 = vst [vmem:[%s972_s28 + $0x10] sm:$0xff] %v715_v48  ;;  %567 = vst [vmem:[%s972_s28 + $0x50] sm:$0xff] %v739_v49 }
  0xfb   : > { %v717_v52 = vpop.f32.mrf.mxu0  ;;  %v741_v53 = vpop.f32.mrf.mxu1 }
  0xfc   : > { %v718_v54 = vadd.f32 %v717_v52, %v716_v50  ;;  %v742_v55 = vadd.f32 %v741_v53, %v740_v51 }
  0xfd   : > { %v719_v56 = vpop.f32.mrf.mxu0  ;;  %v743_v57 = vpop.f32.mrf.mxu1 }
  0xfe   : > { %560 = vst [vmem:[%s972_s28 + $0x18] sm:$0xff] %v718_v54  ;;  %568 = vst [vmem:[%s972_s28 + $0x58] sm:$0xff] %v742_v55 }
  0xff   : > { %v720_v58 = vpop.f32.mrf.mxu0  ;;  %v744_v59 = vpop.f32.mrf.mxu1 }
 0x100   : > { %v721_v60 = vadd.f32 %v720_v58, %v719_v56  ;;  %v745_v61 = vadd.f32 %v744_v59, %v743_v57 }
 0x101   : > { %v722_v62 = vpop.f32.mrf.mxu0  ;;  %v746_v63 = vpop.f32.mrf.mxu1 }
 0x102   : > { %561 = vst [vmem:[%s972_s28 + $0x20] sm:$0xff] %v721_v60  ;;  %569 = vst [vmem:[%s972_s28 + $0x60] sm:$0xff] %v745_v61 }
 0x103   : > { %v723_v0 = vpop.f32.mrf.mxu0  ;;  %v747_v1 = vpop.f32.mrf.mxu1 }
 0x104   : > { %v724_v2 = vadd.f32 %v723_v0, %v722_v62  ;;  %v748_v3 = vadd.f32 %v747_v1, %v746_v63 }
 0x105   : > { %v725_v4 = vpop.f32.mrf.mxu0  ;;  %v749_v5 = vpop.f32.mrf.mxu1 }
 0x106   : > { %562 = vst [vmem:[%s972_s28 + $0x28] sm:$0xff] %v724_v2  ;;  %570 = vst [vmem:[%s972_s28 + $0x68] sm:$0xff] %v748_v3 }
 0x107   : > { %v726_v6 = vpop.f32.mrf.mxu0  ;;  %v750_v7 = vpop.f32.mrf.mxu1 }
 0x108   : > { %v727_v8 = vadd.f32 %v726_v6, %v725_v4  ;;  %v751_v9 = vadd.f32 %v750_v7, %v749_v5 }
 0x109   : > { %v728_v10 = vpop.f32.mrf.mxu0  ;;  %v752_v11 = vpop.f32.mrf.mxu1 }
 0x10a   : > { %563 = vst [vmem:[%s972_s28 + $0x30] sm:$0xff] %v727_v8  ;;  %571 = vst [vmem:[%s972_s28 + $0x70] sm:$0xff] %v751_v9 }
 0x10b   : > { %v729_v12 = vpop.f32.mrf.mxu0  ;;  %v753_v13 = vpop.f32.mrf.mxu1 }
 0x10c   : > { %v730_v14 = vadd.f32 %v729_v12, %v728_v10  ;;  %v754_v15 = vadd.f32 %v753_v13, %v752_v11 }
 0x10e   : > { %564 = vst [vmem:[%s972_s28 + $0x38] sm:$0xff] %v730_v14  ;;  %572 = vst [vmem:[%s972_s28 + $0x78] sm:$0xff] %v754_v15 }
 0x10f PF: > { %s12_s11 = sadd.s32 1, %s858_s11   ;;  %s1002_s9 = smov %s854_s10 }
 0x110   : > { %p9_p5 = scmp.ge.s32.totalorder %s12_s11, 4   ;;  %s1003_s10 = smov %s1005_s12 }
 0x112   :  { %11 = sbr.rel (!%p9_p5) target bundleno = 2 (0x2), region = 63 }

// kernel: pippnp_forward.2
= control target key start
LH: loop header
LB: loop body
LE: loop exit
PB: predicated region body
PF: predicated region fallthrough
CT: control target
= control target key end

     0   :  { %s1513_s27 = smov 0   ;;  %s1824_s0 = inlined_call_operand.vmem [shape: f32[256,128], index: 0, kind: input, shape index: {}]   ;;  %s1825_s1 = inlined_call_operand.vmem [shape: f32[128,128], index: 1, kind: input, shape index: {}]   ;;  %s1826_s2 = inlined_call_operand.vmem [shape: f32[1,128], index: 2, kind: input, shape index: {}]   ;;  %s1827_s3 = inlined_call_operand.vmem [shape: f32[128,128], index: 3, kind: input, shape index: {}]   ;;  %s1828_s4 = inlined_call_operand.vmem [shape: f32[1,128], index: 4, kind: input, shape index: {}]   ;;  %s1829_s5 = inlined_call_operand.vmem [shape: f32[128,128], index: 5, kind: input, shape index: {}]   ;;  %s1830_s6 = inlined_call_operand.vmem [shape: f32[1,128], index: 6, kind: input, shape index: {}]   ;;  %s1831_s7 = inlined_call_operand.vmem [shape: f32[256,128], index: 7, kind: output, shape index: {0}]   ;;  %s1832_s8 = inlined_call_operand.vmem [shape: bf16[256,128], index: 8, kind: output, shape index: {1}]  }
   0x1 LB: > { %s1061_s28 = sadd.s32 4294967295, %s1466_s27   ;;  %p1065_p0 = scmp.ge.s32.totalorder %s1466_s27, 1  ;;  %s1466_s27 = sphi %s1513_s27, %s19_s27  }
   0x2   : > { %p266_p1 = scmp.lt.s32.totalorder %s1466_s27, 3 }
   0x4   : > { %p267_p2 = pnand %p1065_p0, %p266_p1 }
   0x5   : > { %s1066_s11 = sshll.u32 (!%p267_p2), %s1061_s28, 4 }
   0x6   : > { %270 = sbr.rel (%p267_p2) target bundleno = 672 (0x2a0), region = 48  ;;  %p306_p3 = scmp.lt.s32.totalorder (!%p267_p2), %s1066_s11, 31 }
   0xb   : > { %v354_v0 = vld [vmem:[%s1825_s1 + $0x78] sm:$0xff]  ;;  %v353_v1 = vld [vmem:[%s1825_s1 + $0x70] sm:$0xff]  ;;  %v352_v2 = vld [vmem:[%s1825_s1 + $0x68] sm:$0xff]  ;;  %s1834_s11 = smov (!%p306_p3, %s1066_s11), 31 }
   0xc   : > { %1252 = vmatprep.subr.mxu0 %v354_v0  ;;  %v351_v3 = vld [vmem:[%s1825_s1 + $0x60] sm:$0xff]  ;;  %s1067_s16 = sshll.u32 %s1834_s11, 3  ;;  %v538_v4 = vld [vmem:[%s1827_s3 + $0x78] sm:$0xff]  ;;  %v537_v6 = vld [vmem:[%s1827_s3 + $0x70] sm:$0xff]  ;;  %s1071_s24 = sshll.u32 %s1834_s11, 2 }
   0xd   : > { %1253 = vmatpush3.msra.mxu0 %v354_v0  ;;  %v350_v5 = vld [vmem:[%s1825_s1 + $0x58] sm:$0xff]  ;;  %s1547_s23 = scalar_lea.vmem %s1824_s0, %s1067_s16  ;;  %1308 = vmatprep.subr.mxu1 %v538_v4  ;;  %v349_v8 = vld [vmem:[%s1825_s1 + $0x50] sm:$0xff]  ;;  %v536_v9 = vld [vmem:[%s1827_s3 + $0x68] sm:$0xff]  ;;  %s1773_s22 = scalar_lea.vmem %s1831_s7, %s1067_s16 }
   0xe   : > { %1254 = vmatprep.subr.mxu0 %v353_v1  ;;  %v323_v7 = vld [vmem:[%s1547_s23] sm:$0xff]  ;;  %1309 = vmatpush3.msra.mxu1 %v538_v4  ;;  %v348_v10 = vld [vmem:[%s1825_s1 + $0x48] sm:$0xff]  ;;  %v534_v13 = vld [vmem:[%s1827_s3 + $0x58] sm:$0xff]  ;;  %s1782_s28 = scalar_lea.vmem %s1832_s8, %s1071_s24 }
   0xf   : > { %1255 = vmatpush3.msra.mxu0 %v353_v1  ;;  %1284 = vmatprep.mubr.f32.mxu0 %v323_v7  ;;  %v535_v11 = vld [vmem:[%s1827_s3 + $0x60] sm:$0xff]  ;;  %v346_v14 = vld [vmem:[%s1825_s1 + $0x38] sm:$0xff]  ;;  %v533_v15 = vld [vmem:[%s1827_s3 + $0x50] sm:$0xff] }
  0x10   : > { %1256 = vmatprep.subr.mxu0 %v352_v2  ;;  %1310 = vmatprep.subr.mxu1 %v537_v6  ;;  %v347_v12 = vld [vmem:[%s1825_s1 + $0x40] sm:$0xff]  ;;  %v345_v16 = vld [vmem:[%s1825_s1 + $0x30] sm:$0xff]  ;;  %v532_v17 = vld [vmem:[%s1827_s3 + $0x48] sm:$0xff] }
  0x11   : > { %1257 = vmatpush3.msra.mxu0 %v352_v2  ;;  %1311 = vmatpush3.msra.mxu1 %v537_v6  ;;  %v344_v18 = vld [vmem:[%s1825_s1 + $0x28] sm:$0xff]  ;;  %v531_v19 = vld [vmem:[%s1827_s3 + $0x40] sm:$0xff]  ;;  %v530_v21 = vld [vmem:[%s1827_s3 + $0x38] sm:$0xff] }
  0x12   : > { %1258 = vmatprep.subr.mxu0 %v351_v3  ;;  %1312 = vmatprep.subr.mxu1 %v536_v9  ;;  %v343_v20 = vld [vmem:[%s1825_s1 + $0x20] sm:$0xff]  ;;  %v342_v22 = vld [vmem:[%s1825_s1 + $0x18] sm:$0xff]  ;;  %v529_v23 = vld [vmem:[%s1827_s3 + $0x30] sm:$0xff] }
  0x13   : > { %1259 = vmatpush3.msra.mxu0 %v351_v3  ;;  %1313 = vmatpush3.msra.mxu1 %v536_v9  ;;  %v341_v24 = vld [vmem:[%s1825_s1 + $0x10] sm:$0xff]  ;;  %v528_v25 = vld [vmem:[%s1827_s3 + $0x28] sm:$0xff]  ;;  %v527_v27 = vld [vmem:[%s1827_s3 + $0x20] sm:$0xff] }
  0x14   : > { %1260 = vmatprep.subr.mxu0 %v350_v5  ;;  %1314 = vmatprep.subr.mxu1 %v535_v11  ;;  %v340_v26 = vld [vmem:[%s1825_s1 + $0x8] sm:$0xff]  ;;  %v339_v28 = vld [vmem:[%s1825_s1] sm:$0xff]  ;;  %v325_v30 = vld [vmem:[%s1547_s23 + $0x10] sm:$0xff] }
  0x15   : > { %1261 = vmatpush3.msra.mxu0 %v350_v5  ;;  %1315 = vmatpush3.msra.mxu1 %v535_v11  ;;  %v324_v29 = vld [vmem:[%s1547_s23 + $0x8] sm:$0xff]  ;;  %v326_v31 = vld [vmem:[%s1547_s23 + $0x18] sm:$0xff]  ;;  %v327_v32 = vld [vmem:[%s1547_s23 + $0x20] sm:$0xff] }
  0x16   : > { %1262 = vmatprep.subr.mxu0 %v349_v8  ;;  %1316 = vmatprep.subr.mxu1 %v534_v13  ;;  %v328_v33 = vld [vmem:[%s1547_s23 + $0x28] sm:$0xff]  ;;  %v329_v34 = vld [vmem:[%s1547_s23 + $0x30] sm:$0xff]  ;;  %v330_v35 = vld [vmem:[%s1547_s23 + $0x38] sm:$0xff] }
  0x17   : > { %1263 = vmatpush3.msra.mxu0 %v349_v8  ;;  %1317 = vmatpush3.msra.mxu1 %v534_v13  ;;  %v331_v36 = vld [vmem:[%s1547_s23 + $0x40] sm:$0xff]  ;;  %v332_v37 = vld [vmem:[%s1547_s23 + $0x48] sm:$0xff]  ;;  %v333_v38 = vld [vmem:[%s1547_s23 + $0x50] sm:$0xff] }
  0x18   : > { %1264 = vmatprep.subr.mxu0 %v348_v10  ;;  %1318 = vmatprep.subr.mxu1 %v533_v15  ;;  %v334_v39 = vld [vmem:[%s1547_s23 + $0x58] sm:$0xff]  ;;  %v335_v40 = vld [vmem:[%s1547_s23 + $0x60] sm:$0xff]  ;;  %v336_v41 = vld [vmem:[%s1547_s23 + $0x68] sm:$0xff] }
  0x19   : > { %1265 = vmatpush3.msra.mxu0 %v348_v10  ;;  %1319 = vmatpush3.msra.mxu1 %v533_v15  ;;  %v337_v42 = vld [vmem:[%s1547_s23 + $0x70] sm:$0xff]  ;;  %v338_v43 = vld [vmem:[%s1547_s23 + $0x78] sm:$0xff]  ;;  %v524_v46 = vld [vmem:[%s1827_s3 + $0x8] sm:$0xff] }
  0x1a   : > { %1266 = vmatprep.subr.mxu0 %v347_v12  ;;  %1320 = vmatprep.subr.mxu1 %v532_v17  ;;  %v526_v44 = vld [vmem:[%s1827_s3 + $0x18] sm:$0xff]  ;;  %v525_v45 = vld [vmem:[%s1827_s3 + $0x10] sm:$0xff]  ;;  %v523_v47 = vld [vmem:[%s1827_s3] sm:$0xff] }
  0x1b   : > { %1267 = vmatpush3.msra.mxu0 %v347_v12  ;;  %1321 = vmatpush3.msra.mxu1 %v532_v17  ;;  %v722_v48 = vld [vmem:[%s1829_s5 + $0x78] sm:$0xff]  ;;  %v721_v49 = vld [vmem:[%s1829_s5 + $0x70] sm:$0xff]  ;;  %v720_v50 = vld [vmem:[%s1829_s5 + $0x68] sm:$0xff] }
  0x1c   : > { %1268 = vmatprep.subr.mxu0 %v346_v14  ;;  %1322 = vmatprep.subr.mxu1 %v531_v19  ;;  %v719_v51 = vld [vmem:[%s1829_s5 + $0x60] sm:$0xff]  ;;  %v1658_v52 = vld [vmem:[%s1829_s5 + $0x58] sm:$0xff]  ;;  %v1663_v53 = vld [vmem:[%s1829_s5 + $0x50] sm:$0xff] }
  0x1d   : > { %1269 = vmatpush3.msra.mxu0 %v346_v14  ;;  %1323 = vmatpush3.msra.mxu1 %v531_v19  ;;  %v1670_v54 = vld [vmem:[%s1829_s5 + $0x48] sm:$0xff]  ;;  %v1677_v55 = vld [vmem:[%s1829_s5 + $0x40] sm:$0xff]  ;;  %v1684_v56 = vld [vmem:[%s1829_s5 + $0x38] sm:$0xff] }
  0x1e   : > { %1270 = vmatprep.subr.mxu0 %v345_v16  ;;  %1324 = vmatprep.subr.mxu1 %v530_v21  ;;  %v1691_v57 = vld [vmem:[%s1829_s5 + $0x30] sm:$0xff]  ;;  %v1698_v58 = vld [vmem:[%s1829_s5 + $0x28] sm:$0xff]  ;;  %v1705_v59 = vld [vmem:[%s1829_s5 + $0x20] sm:$0xff] }
  0x1f   : > { %1271 = vmatpush3.msra.mxu0 %v345_v16  ;;  %1325 = vmatpush3.msra.mxu1 %v530_v21  ;;  %v1714_v60 = vld [vmem:[%s1826_s2] ss:$0 sm:$0xff] }
  0x20   : > { %1272 = vmatprep.subr.mxu0 %v344_v18  ;;  %1326 = vmatprep.subr.mxu1 %v529_v23 }
  0x21   : > { %1273 = vmatpush3.msra.mxu0 %v344_v18  ;;  %1327 = vmatpush3.msra.mxu1 %v529_v23 }
  0x22   : > { %1274 = vmatprep.subr.mxu0 %v343_v20  ;;  %1328 = vmatprep.subr.mxu1 %v528_v25 }
  0x23   : > { %1275 = vmatpush3.msra.mxu0 %v343_v20  ;;  %1329 = vmatpush3.msra.mxu1 %v528_v25 }
  0x24   : > { %1276 = vmatprep.subr.mxu0 %v342_v22  ;;  %1330 = vmatprep.subr.mxu1 %v527_v27 }
  0x25   : > { %1277 = vmatpush3.msra.mxu0 %v342_v22  ;;  %1331 = vmatpush3.msra.mxu1 %v527_v27 }
  0x26   : > { %1278 = vmatprep.subr.mxu0 %v341_v24  ;;  %1332 = vmatprep.subr.mxu1 %v526_v44 }
  0x27   : > { %1279 = vmatpush3.msra.mxu0 %v341_v24  ;;  %1333 = vmatpush3.msra.mxu1 %v526_v44 }
  0x28   : > { %1280 = vmatprep.subr.mxu0 %v340_v26  ;;  %1334 = vmatprep.subr.mxu1 %v525_v45 }
  0x29   : > { %1281 = vmatpush3.msra.mxu0 %v340_v26  ;;  %1335 = vmatpush3.msra.mxu1 %v525_v45  ;;  %v710_v45 = vld [vmem:[%s1829_s5 + $0x18] sm:$0xff] }
  0x2a   : > { %1282 = vmatprep.subr.mxu0 %v339_v28  ;;  %1336 = vmatprep.subr.mxu1 %v524_v46 }
  0x2b   : > { %1283 = vmatpush3.msra.mxu0 %v339_v28  ;;  %1337 = vmatpush3.msra.mxu1 %v524_v46  ;;  %v709_v46 = vld [vmem:[%s1829_s5 + $0x10] sm:$0xff] }
  0x2c   : > { %1285 = vmatmul.mubr.f32.vlgmr.msra.gmra.mxu0 %v324_v29  ;;  %1338 = vmatprep.subr.mxu1 %v523_v47 }
  0x2d   : > { %1287 = vmatprep.mubr.f32.mxu0 %v325_v30  ;;  %1339 = vmatpush3.msra.mxu1 %v523_v47  ;;  %v708_v47 = vld [vmem:[%s1829_s5 + $0x8] sm:$0xff] }
  0x2e   : > { %1364 = vmatprep.subr.mxu0 %v722_v48  ;;  %1420 = vmatprep.subr.mxu1 %v722_v48 }
  0x2f   : > { %1365 = vmatpush3.msra.mxu0 %v722_v48 }
  0x30   : > { %1288 = vmatmul.mubr.f32.gmra.mxu0 %v326_v31  ;;  %1366 = vmatprep.subr.mxu0 %v721_v49 }
  0x31   : > { %1290 = vmatprep.mubr.f32.mxu0 %v327_v32  ;;  %1367 = vmatpush3.msra.mxu0 %v721_v49 }
  0x32   : > { %1368 = vmatprep.subr.mxu0 %v720_v50 }
  0x33   : > { %1369 = vmatpush3.msra.mxu0 %v720_v50 }
  0x34   : > { %1291 = vmatmul.mubr.f32.gmra.mxu0 %v328_v33  ;;  %1370 = vmatprep.subr.mxu0 %v719_v51 }
  0x35   : > { %1293 = vmatprep.mubr.f32.mxu0 %v329_v34  ;;  %1371 = vmatpush3.msra.mxu0 %v719_v51 }
  0x36   : > { %1372 = vmatprep.subr.mxu0 %v1658_v52 }
  0x37   : > { %1373 = vmatpush3.msra.mxu0 %v1658_v52 }
  0x38   : > { %1294 = vmatmul.mubr.f32.gmra.mxu0 %v330_v35  ;;  %1374 = vmatprep.subr.mxu0 %v1663_v53 }
  0x39   : > { %1296 = vmatprep.mubr.f32.mxu0 %v331_v36  ;;  %1375 = vmatpush3.msra.mxu0 %v1663_v53 }
  0x3a   : > { %1376 = vmatprep.subr.mxu0 %v1670_v54 }
  0x3b   : > { %1377 = vmatpush3.msra.mxu0 %v1670_v54 }
  0x3c   : > { %1297 = vmatmul.mubr.f32.gmra.mxu0 %v332_v37  ;;  %1378 = vmatprep.subr.mxu0 %v1677_v55 }
  0x3d   : > { %1299 = vmatprep.mubr.f32.mxu0 %v333_v38  ;;  %1379 = vmatpush3.msra.mxu0 %v1677_v55 }
  0x3e   : > { %1380 = vmatprep.subr.mxu0 %v1684_v56 }
  0x3f   : > { %1381 = vmatpush3.msra.mxu0 %v1684_v56 }
  0x40   : > { %1300 = vmatmul.mubr.f32.gmra.mxu0 %v334_v39  ;;  %1382 = vmatprep.subr.mxu0 %v1691_v57 }
  0x41   : > { %1302 = vmatprep.mubr.f32.mxu0 %v335_v40  ;;  %1383 = vmatpush3.msra.mxu0 %v1691_v57 }
  0x42   : > { %1384 = vmatprep.subr.mxu0 %v1698_v58 }
  0x43   : > { %1385 = vmatpush3.msra.mxu0 %v1698_v58 }
  0x44   : > { %1303 = vmatmul.mubr.f32.gmra.mxu0 %v336_v41  ;;  %1386 = vmatprep.subr.mxu0 %v1705_v59 }
  0x45   : > { %1305 = vmatprep.mubr.f32.mxu0 %v337_v42  ;;  %1387 = vmatpush3.msra.mxu0 %v1705_v59 }
  0x46   : > { %1388 = vmatprep.subr.mxu0 %v710_v45 }
  0x47   : > { %1389 = vmatpush3.msra.mxu0 %v710_v45 }
  0x48   : > { %1306 = vmatmul.mubr.f32.gmra.mxu0 %v338_v43  ;;  %1390 = vmatprep.subr.mxu0 %v709_v46 }
  0x49   : > { %1391 = vmatpush3.msra.mxu0 %v709_v46 }
  0x4a   : > { %1392 = vmatprep.subr.mxu0 %v708_v47 }
  0x4b   : > { %1393 = vmatpush3.msra.mxu0 %v708_v47 }
  0xec   : > { %v1286_v61 = vpop.f32.mrf.mxu0 }
  0xed   : > { %v434_v62 = vadd.f32 %v1286_v61, %v1714_v60 }
  0xee   : > { %v428_v63 = vpop.f32.mrf.mxu0 }
  0xef   : > { %v429_v0 = vadd.f32 %v1714_v60, %v428_v63  ;;  %v508_v3 = vmax.f32 %v434_v62, 0.0 }
  0xf0   : > { %v1289_v1 = vpop.f32.mrf.mxu0 }
  0xf1   : > { %v507_v2 = vmax.f32 %v429_v0, 0.0  ;;  %v444_v4 = vadd.f32 %v1289_v1, %v1714_v60 }
  0xf2   : > { %v438_v5 = vpop.f32.mrf.mxu0 }
  0xf3   : > { %v439_v6 = vadd.f32 %v1714_v60, %v438_v5  ;;  %1340 = vmatprep.mubr.f32.mxu1 %v507_v2  ;;  %v510_v9 = vmax.f32 %v444_v4, 0.0 }
  0xf4   : > { %v1292_v7 = vpop.f32.mrf.mxu0  ;;  %1341 = vmatmul.mubr.f32.vlgmr.msra.gmra.mxu1 %v508_v3 }
  0xf5   : > { %v509_v8 = vmax.f32 %v439_v6, 0.0  ;;  %1436 = vmatpush3.msra.mxu1 %v722_v48  ;;  %v454_v10 = vadd.f32 %v1292_v7, %v1714_v60  ;;  %v707_v48 = vld [vmem:[%s1829_s5] sm:$0xff] }
  0xf6   : > { %v448_v11 = vpop.f32.mrf.mxu0  ;;  %1421 = vmatprep.subr.mxu1 %v721_v49  ;;  %1394 = vmatprep.subr.mxu0 %v707_v48 }
  0xf7   : > { %v449_v12 = vadd.f32 %v1714_v60, %v448_v11  ;;  %1343 = vmatprep.mubr.f32.mxu1 %v509_v8  ;;  %1437 = vmatpush3.msra.mxu1 %v721_v49  ;;  %v512_v15 = vmax.f32 %v454_v10, 0.0  ;;  %v1073_v49 = vld [vmem:[%s1828_s4] ss:$0 sm:$0xff] }
  0xf8   : > { %v1295_v13 = vpop.f32.mrf.mxu0  ;;  %1344 = vmatmul.mubr.f32.gmra.mxu1 %v510_v9  ;;  %1422 = vmatprep.subr.mxu1 %v720_v50 }
  0xf9   : > { %v511_v14 = vmax.f32 %v449_v12, 0.0  ;;  %1438 = vmatpush3.msra.mxu1 %v720_v50  ;;  %v464_v16 = vadd.f32 %v1295_v13, %v1714_v60  ;;  %1395 = vmatpush3.msra.mxu0 %v707_v48 }
  0xfa   : > { %v458_v17 = vpop.f32.mrf.mxu0  ;;  %1423 = vmatprep.subr.mxu1 %v719_v51 }
  0xfb   : > { %v459_v18 = vadd.f32 %v1714_v60, %v458_v17  ;;  %1346 = vmatprep.mubr.f32.mxu1 %v511_v14  ;;  %1439 = vmatpush3.msra.mxu1 %v719_v51  ;;  %v514_v21 = vmax.f32 %v464_v16, 0.0 }
  0xfc   : > { %v1298_v19 = vpop.f32.mrf.mxu0  ;;  %1347 = vmatmul.mubr.f32.gmra.mxu1 %v512_v15  ;;  %1424 = vmatprep.subr.mxu1 %v1658_v52 }
  0xfd   : > { %v513_v20 = vmax.f32 %v459_v18, 0.0  ;;  %1440 = vmatpush3.msra.mxu1 %v1658_v52  ;;  %v474_v22 = vadd.f32 %v1298_v19, %v1714_v60 }
  0xfe   : > { %v468_v23 = vpop.f32.mrf.mxu0  ;;  %1425 = vmatprep.subr.mxu1 %v1663_v53 }
  0xff   : > { %v469_v24 = vadd.f32 %v1714_v60, %v468_v23  ;;  %1349 = vmatprep.mubr.f32.mxu1 %v513_v20  ;;  %1441 = vmatpush3.msra.mxu1 %v1663_v53  ;;  %v516_v27 = vmax.f32 %v474_v22, 0.0 }
 0x100   : > { %v1301_v25 = vpop.f32.mrf.mxu0  ;;  %1350 = vmatmul.mubr.f32.gmra.mxu1 %v514_v21  ;;  %1426 = vmatprep.subr.mxu1 %v1670_v54 }
 0x101   : > { %v515_v26 = vmax.f32 %v469_v24, 0.0  ;;  %1442 = vmatpush3.msra.mxu1 %v1670_v54  ;;  %v484_v28 = vadd.f32 %v1301_v25, %v1714_v60 }
 0x102   : > { %v478_v29 = vpop.f32.mrf.mxu0  ;;  %1427 = vmatprep.subr.mxu1 %v1677_v55 }
 0x103   : > { %v479_v30 = vadd.f32 %v1714_v60, %v478_v29  ;;  %1352 = vmatprep.mubr.f32.mxu1 %v515_v26  ;;  %1443 = vmatpush3.msra.mxu1 %v1677_v55  ;;  %v518_v33 = vmax.f32 %v484_v28, 0.0 }
 0x104   : > { %v1304_v31 = vpop.f32.mrf.mxu0  ;;  %1353 = vmatmul.mubr.f32.gmra.mxu1 %v516_v27  ;;  %1428 = vmatprep.subr.mxu1 %v1684_v56 }
 0x105   : > { %v517_v32 = vmax.f32 %v479_v30, 0.0  ;;  %1444 = vmatpush3.msra.mxu1 %v1684_v56  ;;  %v494_v34 = vadd.f32 %v1304_v31, %v1714_v60 }
 0x106   : > { %v488_v35 = vpop.f32.mrf.mxu0  ;;  %1429 = vmatprep.subr.mxu1 %v1691_v57 }
 0x107   : > { %v489_v36 = vadd.f32 %v1714_v60, %v488_v35  ;;  %1355 = vmatprep.mubr.f32.mxu1 %v517_v32  ;;  %1445 = vmatpush3.msra.mxu1 %v1691_v57  ;;  %v520_v39 = vmax.f32 %v494_v34, 0.0  ;;  %v1766_v34 = vld [vmem:[%s1830_s6] ss:$0 sm:$0xff] }
 0x108   : > { %v1307_v37 = vpop.f32.mrf.mxu0  ;;  %1356 = vmatmul.mubr.f32.gmra.mxu1 %v518_v33  ;;  %1430 = vmatprep.subr.mxu1 %v1698_v58 }
 0x109   : > { %v519_v38 = vmax.f32 %v489_v36, 0.0  ;;  %1446 = vmatpush3.msra.mxu1 %v1698_v58  ;;  %v504_v40 = vadd.f32 %v1307_v37, %v1714_v60 }
 0x10a   : > { %v498_v41 = vpop.f32.mrf.mxu0  ;;  %1431 = vmatprep.subr.mxu1 %v1705_v59 }
 0x10b   : > { %v499_v42 = vadd.f32 %v1714_v60, %v498_v41  ;;  %1358 = vmatprep.mubr.f32.mxu1 %v519_v38  ;;  %1447 = vmatpush3.msra.mxu1 %v1705_v59  ;;  %v522_v44 = vmax.f32 %v504_v40, 0.0 }
 0x10c   : > { %1359 = vmatmul.mubr.f32.gmra.mxu1 %v520_v39  ;;  %1432 = vmatprep.subr.mxu1 %v710_v45 }
 0x10d   : > { %v521_v43 = vmax.f32 %v499_v42, 0.0  ;;  %1448 = vmatpush3.msra.mxu1 %v710_v45 }
 0x10e   : > { %1433 = vmatprep.subr.mxu1 %v709_v46 }
 0x10f   : > { %1361 = vmatprep.mubr.f32.mxu1 %v521_v43  ;;  %1449 = vmatpush3.msra.mxu1 %v709_v46 }
 0x110   : > { %1362 = vmatmul.mubr.f32.gmra.mxu1 %v522_v44  ;;  %1434 = vmatprep.subr.mxu1 %v708_v47 }
 0x111   : > { %1450 = vmatpush3.msra.mxu1 %v708_v47 }
 0x112   : > { %1435 = vmatprep.subr.mxu1 %v707_v48 }
 0x113   : > { %1451 = vmatpush3.msra.mxu1 %v707_v48 }
 0x1b4   : > { %v1342_v50 = vpop.f32.mrf.mxu1 }
 0x1b5   : > { %v618_v51 = vadd.f32 %v1342_v50, %v1073_v49 }
 0x1b6   : > { %v612_v52 = vpop.f32.mrf.mxu1 }
 0x1b7   : > { %v613_v53 = vadd.f32 %v1073_v49, %v612_v52  ;;  %v692_v56 = vmax.f32 %v618_v51, 0.0 }
 0x1b8   : > { %v1345_v54 = vpop.f32.mrf.mxu1 }
 0x1b9   : > { %v691_v55 = vmax.f32 %v613_v53, 0.0  ;;  %v628_v57 = vadd.f32 %v1345_v54, %v1073_v49 }
 0x1ba   : > { %v622_v58 = vpop.f32.mrf.mxu1 }
 0x1bb   : > { %v623_v59 = vadd.f32 %v1073_v49, %v622_v58  ;;  %1396 = vmatprep.mubr.f32.mxu0 %v691_v55  ;;  %v694_v62 = vmax.f32 %v628_v57, 0.0 }
 0x1bc   : > { %v1348_v60 = vpop.f32.mrf.mxu1  ;;  %1397 = vmatmul.mubr.f32.vlgmr.msra.gmra.mxu0 %v692_v56 }
 0x1bd   : > { %v693_v61 = vmax.f32 %v623_v59, 0.0  ;;  %v638_v63 = vadd.f32 %v1348_v60, %v1073_v49 }
 0x1be   : > { %v632_v0 = vpop.f32.mrf.mxu1 }
 0x1bf   : > { %v633_v1 = vadd.f32 %v1073_v49, %v632_v0  ;;  %1399 = vmatprep.mubr.f32.mxu0 %v693_v61  ;;  %v696_v4 = vmax.f32 %v638_v63, 0.0 }
 0x1c0   : > { %v1351_v2 = vpop.f32.mrf.mxu1  ;;  %1400 = vmatmul.mubr.f32.gmra.mxu0 %v694_v62 }
 0x1c1   : > { %v695_v3 = vmax.f32 %v633_v1, 0.0  ;;  %v648_v5 = vadd.f32 %v1351_v2, %v1073_v49 }
 0x1c2   : > { %v642_v6 = vpop.f32.mrf.mxu1 }
 0x1c3   : > { %v643_v7 = vadd.f32 %v1073_v49, %v642_v6  ;;  %1402 = vmatprep.mubr.f32.mxu0 %v695_v3  ;;  %v698_v10 = vmax.f32 %v648_v5, 0.0 }
 0x1c4   : > { %v1354_v8 = vpop.f32.mrf.mxu1  ;;  %1403 = vmatmul.mubr.f32.gmra.mxu0 %v696_v4 }
 0x1c5   : > { %v697_v9 = vmax.f32 %v643_v7, 0.0  ;;  %v658_v11 = vadd.f32 %v1354_v8, %v1073_v49 }
 0x1c6   : > { %v652_v12 = vpop.f32.mrf.mxu1 }
 0x1c7   : > { %v653_v13 = vadd.f32 %v1073_v49, %v652_v12  ;;  %1405 = vmatprep.mubr.f32.mxu0 %v697_v9  ;;  %v700_v16 = vmax.f32 %v658_v11, 0.0 }
 0x1c8   : > { %v1357_v14 = vpop.f32.mrf.mxu1  ;;  %1406 = vmatmul.mubr.f32.gmra.mxu0 %v698_v10 }
 0x1c9   : > { %v699_v15 = vmax.f32 %v653_v13, 0.0  ;;  %v668_v17 = vadd.f32 %v1357_v14, %v1073_v49 }
 0x1ca   : > { %v662_v18 = vpop.f32.mrf.mxu1 }
 0x1cb   : > { %v663_v19 = vadd.f32 %v1073_v49, %v662_v18  ;;  %1408 = vmatprep.mubr.f32.mxu1 %v699_v15  ;;  %v702_v22 = vmax.f32 %v668_v17, 0.0 }
 0x1cc   : > { %v1360_v20 = vpop.f32.mrf.mxu1  ;;  %1409 = vmatmul.mubr.f32.vlgmr.msra.gmra.mxu1 %v700_v16 }
 0x1cd   : > { %v701_v21 = vmax.f32 %v663_v19, 0.0  ;;  %v678_v23 = vadd.f32 %v1360_v20, %v1073_v49 }
 0x1ce   : > { %v672_v24 = vpop.f32.mrf.mxu1 }
 0x1cf   : > { %v673_v25 = vadd.f32 %v1073_v49, %v672_v24  ;;  %1411 = vmatprep.mubr.f32.mxu1 %v701_v21  ;;  %v704_v28 = vmax.f32 %v678_v23, 0.0 }
 0x1d0   : > { %v1363_v26 = vpop.f32.mrf.mxu1  ;;  %1412 = vmatmul.mubr.f32.gmra.mxu1 %v702_v22 }
 0x1d1   : > { %v703_v27 = vmax.f32 %v673_v25, 0.0  ;;  %v688_v29 = vadd.f32 %v1363_v26, %v1073_v49 }
 0x1d2   : > { %v682_v30 = vpop.f32.mrf.mxu1 }
 0x1d3   : > { %v683_v31 = vadd.f32 %v1073_v49, %v682_v30  ;;  %1414 = vmatprep.mubr.f32.mxu1 %v703_v27  ;;  %v706_v33 = vmax.f32 %v688_v29, 0.0 }
 0x1d4   : > { %1415 = vmatmul.mubr.f32.gmra.mxu1 %v704_v28 }
 0x1d5   : > { %v705_v32 = vmax.f32 %v683_v31, 0.0 }
 0x1d7   : > { %1417 = vmatprep.mubr.f32.mxu1 %v705_v32 }
 0x1d8   : > { %1418 = vmatmul.mubr.f32.gmra.mxu1 %v706_v33 }
 0x27c   : > { %v1398_v35 = vpop.f32.mrf.mxu0 }
 0x27d   : > { %v802_v36 = vadd.f32 %v1398_v35, %v1766_v34 }
 0x27e   : > { %v796_v37 = vpop.f32.mrf.mxu0 }
 0x27f   : > { %876 = vst [vmem:[%s1773_s22 + $0x8] sm:$0xff] %v802_v36  ;;  %v797_v38 = vadd.f32 %v1766_v34, %v796_v37 }
 0x280   : > { %v1401_v39 = vpop.f32.mrf.mxu0 }
 0x281   : > { %875 = vst [vmem:[%s1773_s22] sm:$0xff] %v797_v38  ;;  %v1112_v40 = vpack.c.bf16 %v802_v36, %v797_v38  ;;  %v812_v41 = vadd.f32 %v1401_v39, %v1766_v34 }
 0x282   : > { %v806_v42 = vpop.f32.mrf.mxu0 }
 0x283   : > { %1113 = vst [vmem:[%s1782_s28] sm:$0xff] %v1112_v40   ;;  %878 = vst [vmem:[%s1773_s22 + $0x18] sm:$0xff] %v812_v41  ;;  %v807_v43 = vadd.f32 %v1766_v34, %v806_v42 }
 0x284   : > { %v1404_v44 = vpop.f32.mrf.mxu0 }
 0x285   : > { %877 = vst [vmem:[%s1773_s22 + $0x10] sm:$0xff] %v807_v43  ;;  %v1117_v45 = vpack.c.bf16 %v812_v41, %v807_v43  ;;  %v822_v46 = vadd.f32 %v1404_v44, %v1766_v34 }
 0x286   : > { %v816_v47 = vpop.f32.mrf.mxu0 }
 0x287   : > { %1149 = vst [vmem:[%s1782_s28 + $0x8] sm:$0xff] %v1117_v45   ;;  %880 = vst [vmem:[%s1773_s22 + $0x28] sm:$0xff] %v822_v46  ;;  %v817_v48 = vadd.f32 %v1766_v34, %v816_v47 }
 0x288   : > { %v1407_v49 = vpop.f32.mrf.mxu0 }
 0x289   : > { %879 = vst [vmem:[%s1773_s22 + $0x20] sm:$0xff] %v817_v48  ;;  %v1122_v50 = vpack.c.bf16 %v822_v46, %v817_v48  ;;  %v832_v51 = vadd.f32 %v1407_v49, %v1766_v34 }
 0x28a   : > { %v826_v52 = vpop.f32.mrf.mxu0 }
 0x28b   : > { %1150 = vst [vmem:[%s1782_s28 + $0x10] sm:$0xff] %v1122_v50   ;;  %882 = vst [vmem:[%s1773_s22 + $0x38] sm:$0xff] %v832_v51  ;;  %v827_v53 = vadd.f32 %v1766_v34, %v826_v52 }
 0x28c   : > { %v1410_v54 = vpop.f32.mrf.mxu1 }
 0x28d   : > { %881 = vst [vmem:[%s1773_s22 + $0x30] sm:$0xff] %v827_v53  ;;  %v1127_v55 = vpack.c.bf16 %v832_v51, %v827_v53  ;;  %v842_v56 = vadd.f32 %v1410_v54, %v1766_v34 }
 0x28e   : > { %v836_v57 = vpop.f32.mrf.mxu1 }
 0x28f   : > { %1151 = vst [vmem:[%s1782_s28 + $0x18] sm:$0xff] %v1127_v55   ;;  %884 = vst [vmem:[%s1773_s22 + $0x48] sm:$0xff] %v842_v56  ;;  %v837_v58 = vadd.f32 %v1766_v34, %v836_v57 }
 0x290   : > { %v1413_v59 = vpop.f32.mrf.mxu1 }
 0x291   : > { %883 = vst [vmem:[%s1773_s22 + $0x40] sm:$0xff] %v837_v58  ;;  %v1132_v60 = vpack.c.bf16 %v842_v56, %v837_v58  ;;  %v852_v61 = vadd.f32 %v1413_v59, %v1766_v34 }
 0x292   : > { %v846_v62 = vpop.f32.mrf.mxu1 }
 0x293   : > { %1152 = vst [vmem:[%s1782_s28 + $0x20] sm:$0xff] %v1132_v60   ;;  %886 = vst [vmem:[%s1773_s22 + $0x58] sm:$0xff] %v852_v61  ;;  %v847_v63 = vadd.f32 %v1766_v34, %v846_v62 }
 0x294   : > { %v1416_v0 = vpop.f32.mrf.mxu1 }
 0x295   : > { %885 = vst [vmem:[%s1773_s22 + $0x50] sm:$0xff] %v847_v63  ;;  %v1137_v1 = vpack.c.bf16 %v852_v61, %v847_v63  ;;  %v862_v2 = vadd.f32 %v1416_v0, %v1766_v34 }
 0x296   : > { %v856_v3 = vpop.f32.mrf.mxu1 }
 0x297   : > { %1153 = vst [vmem:[%s1782_s28 + $0x28] sm:$0xff] %v1137_v1   ;;  %888 = vst [vmem:[%s1773_s22 + $0x68] sm:$0xff] %v862_v2  ;;  %v857_v4 = vadd.f32 %v1766_v34, %v856_v3 }
 0x298   : > { %v1419_v5 = vpop.f32.mrf.mxu1 }
 0x299   : > { %887 = vst [vmem:[%s1773_s22 + $0x60] sm:$0xff] %v857_v4  ;;  %v1142_v6 = vpack.c.bf16 %v862_v2, %v857_v4  ;;  %v872_v7 = vadd.f32 %v1419_v5, %v1766_v34 }
 0x29a   : > { %v866_v8 = vpop.f32.mrf.mxu1 }
 0x29b   : > { %1154 = vst [vmem:[%s1782_s28 + $0x30] sm:$0xff] %v1142_v6   ;;  %890 = vst [vmem:[%s1773_s22 + $0x78] sm:$0xff] %v872_v7  ;;  %v867_v9 = vadd.f32 %v1766_v34, %v866_v8 }
 0x29d   : > { %889 = vst [vmem:[%s1773_s22 + $0x70] sm:$0xff] %v867_v9  ;;  %v1147_v10 = vpack.c.bf16 %v872_v7, %v867_v9 }
 0x29f   : > { %1155 = vst [vmem:[%s1782_s28 + $0x38] sm:$0xff] %v1147_v10  }
 0x2a0 PF: > { %s19_s27 = sadd.s32 1, %s1466_s27  }
 0x2a1   : > { %p16_p4 = scmp.ge.s32.totalorder %s19_s27, 4  }
 0x2a3   :  { %18 = sbr.rel (!%p16_p4) target bundleno = 1 (0x1), region = 90 }

</bundles_post_ra>
